<compile_context>
chip_gen: v7x
topology: tpu7x:2x2x1
jax: 0.10.0
libtpu: 0.0.40
codegen_flags: <defaults>
</compile_context>

<pallas_src>
import functools

import jax
import jax.numpy as jnp
from jax import lax
from jax.experimental import pallas as pl
from jax.experimental.pallas import tpu as pltpu

NBINS = 25      # torch.histc(y, 25, 0.0, 1.0)
ALPHA = 0.8
BETA = 0.2


def _corr_loss_kernel(x_ref, y_ref, out_ref, acc_d_ref, acc_q_ref, *, numel):
    i = pl.program_id(1)
    nb = pl.num_programs(1)

    @pl.when(i == 0)
    def _():
        acc_d_ref[...] = jnp.zeros_like(acc_d_ref)
        acc_q_ref[...] = jnp.zeros_like(acc_q_ref)

    C = y_ref.shape[1]
    rp = y_ref.shape[2]          # padded spatial rows (multiple of 8)
    rg = rp // 8

    yblk = y_ref[0]              # (C, rp, 128), native dtype
    xblk = x_ref[0]
    ys = [yblk[ch].astype(jnp.float32) for ch in range(C)]   # (rp, 128) each
    xs = [xblk[ch].astype(jnp.float32) for ch in range(C)]

    lane = lax.broadcasted_iota(jnp.int32, (1, 128), 1)

    def centered_hist(yc):
        """25-bin histc of yc over [0,1] (1.0 in last bin, out-of-range ignored),
        mean-centered, stored in lanes 0..24 of a (1, 128) row."""
        def body(k, carry):
            hrow, prev = carry
            thr = k.astype(jnp.float32) * (1.0 / NBINS)
            m = (yc >= thr).astype(jnp.float32)                       # 1 cmp / elem
            cnt = jnp.sum(jnp.sum(m, axis=0, keepdims=True),
                          axis=1, keepdims=True)                      # (1, 1)
            # h_{k-1} = c_{k-1} - c_k ; at k == 0 no lane matches -> no-op.
            hrow = jnp.where(lane == k - 1, prev - cnt, hrow)
            return hrow, cnt

        hrow, c_last = lax.fori_loop(
            0, NBINS, body,
            (jnp.zeros((1, 128), jnp.float32), jnp.zeros((1, 1), jnp.float32)))

        # last bin: [24/25, 1.0]  ->  c_24 - count(y > 1)
        over = (yc > 1.0).astype(jnp.float32)
        c_over = jnp.sum(jnp.sum(over, axis=0, keepdims=True),
                         axis=1, keepdims=True)
        hrow = jnp.where(lane == NBINS - 1, c_last - c_over, hrow)

        s = jnp.sum(hrow, axis=1, keepdims=True)                      # in-range count
        # center (avoids the M - s*s^T/N cancellation issue); keep pad lanes at 0
        return jnp.where(lane < NBINS, hrow - s * (1.0 / NBINS), 0.0)

    hc = [centered_hist(ys[ch]) for ch in range(C)]

    def rowdot(a, b):
        return jnp.sum(a * b, axis=1, keepdims=True)                  # (1, 1)

    var = [rowdot(hc[ch], hc[ch]) for ch in range(C)]

    def pearson(a, b):
        # eps guard only matters for degenerate zero-variance histograms
        return rowdot(hc[a], hc[b]) * lax.rsqrt(
            jnp.maximum(var[a] * var[b], 1e-12))

    r01 = pearson(0, 1)   # crg
    r02 = pearson(0, 2)   # crb
    r12 = pearson(1, 2)   # cgb

    # ---- d = x - y ; Qd = A @ d as broadcast FMA (A has unit diagonal) ----
    d0 = xs[0] - ys[0]
    d1 = xs[1] - ys[1]
    d2 = xs[2] - ys[2]

    def accumulate(ref, t):
        # partial (8, 128) accumulation; full reduce deferred to last step
        ref[...] += jnp.sum(jnp.abs(t).reshape(rg, 8, 128), axis=0)

    accumulate(acc_d_ref, d0)
    accumulate(acc_d_ref, d1)
    accumulate(acc_d_ref, d2)
    accumulate(acc_q_ref, d0 + r01 * d1 + r02 * d2)
    accumulate(acc_q_ref, r01 * d0 + d1 + r12 * d2)
    accumulate(acc_q_ref, r02 * d0 + r12 * d1 + d2)

    # ---- finalize: loss_partial = alpha * sum|d|/numel + beta * sum|Qd|/numel ----
    @pl.when(i == nb - 1)
    def _():
        sd = jnp.sum(acc_d_ref[...], keepdims=True)   # (1, 1)
        sq = jnp.sum(acc_q_ref[...], keepdims=True)
        out_ref[...] = ((ALPHA * sd + BETA * sq) * (1.0 / numel)).reshape(1, 1, 1)


def corr_loss(x, y):
    """Pallas TPU implementation of corr_loss.forward(x, y) -> scalar loss."""
    b, c, h, w = y.shape
    assert c == 3, "corr_loss assumes 3 (RGB) channels"
    n = h * w
    n_pad = ((n + 1023) // 1024) * 1024     # lane=128, sublane multiple of 8
    rp = n_pad // 128

    def prep(a):
        af = a.reshape(b, c, n)
        if n_pad != n:
            # pad BOTH x and y with 2.0: d == 0 there and 2.0 is outside [0, 1]
            af = jnp.pad(af, ((0, 0), (0, 0), (0, n_pad - n)),
                         constant_values=2.0)
        return af.reshape(b, c, rp, 128)

    xp = prep(x)
    yp = prep(y)
    numel = b * c * n                        # true element count (no padding)

    # split the batch across the two TensorCores on v7x (harmless on v5e/v6e)
    num_par = 2 if (b % 2 == 0 and b >= 2) else 1
    bb = b // num_par

    block_bytes = c * rp * 128 * max(xp.dtype.itemsize, yp.dtype.itemsize)
    vmem_limit = int(min(128 * 2**20, max(32 * 2**20, 8 * block_bytes + (16 << 20))))
    # TODO(synk): for very large images on v7x (64 MiB VMEM) a spatially tiled
    # two-pass grid (pass 1: histogram moments, pass 2: |d| / |Qd|) is needed.

    kernel = functools.partial(_corr_loss_kernel, numel=numel)

    out = pl.pallas_call(
        kernel,
        out_shape=jax.ShapeDtypeStruct((num_par, 1, 1), jnp.float32),
        grid_spec=pltpu.PrefetchScalarGridSpec(
            num_scalar_prefetch=0,
            grid=(num_par, bb),
            in_specs=[
                pl.BlockSpec((1, c, rp, 128), lambda p, i: (p * bb + i, 0, 0, 0)),
                pl.BlockSpec((1, c, rp, 128), lambda p, i: (p * bb + i, 0, 0, 0)),
            ],
            out_specs=pl.BlockSpec((1, 1, 1), lambda p, i: (p, 0, 0)),
            scratch_shapes=[
                pltpu.VMEM((8, 128), jnp.float32),   # partial sums of |x - y|
                pltpu.VMEM((8, 128), jnp.float32),   # partial sums of |Qd|
            ],
        ),
        compiler_params=pltpu.CompilerParams(
            dimension_semantics=("parallel", "arbitrary"),
            vmem_limit_bytes=vmem_limit,
        ),
    )(xp, yp)
    return jnp.sum(out)


if __name__ == "__main__":
    key = jax.random.PRNGKey(0)
    kx, ky = jax.random.split(key)
    # small shapes consistent with the module: B=2, C=3 (RGB), H=W=16,
    # values in [0, 1) so the [0, 1] histogram is meaningful.
    x = jax.random.uniform(kx, (2, 3, 16, 16), dtype=jnp.float32)
    y = jax.random.uniform(ky, (2, 3, 16, 16), dtype=jnp.float32)

    loss = corr_loss(x, y)
    jax.block_until_ready(loss)
    print("KERNEL_OK")
</pallas_src>

<mosaic_0001>
module attributes {stable_mosaic.version = 11 : i64} {
  func.func @_corr_loss_kernel(%arg0: i32, %arg1: i32, %arg2: memref<1x3x8x128xf32, #tpu.memory_space<vmem>>, %arg3: memref<1x3x8x128xf32, #tpu.memory_space<vmem>>, %arg4: memref<1x1x1xf32, #tpu.memory_space<vmem>>, %arg5: memref<8x128xf32, #tpu.memory_space<vmem>>, %arg6: memref<8x128xf32, #tpu.memory_space<vmem>>) attributes {dimension_semantics = [#tpu.dimension_semantics<parallel>, #tpu.dimension_semantics<arbitrary>], iteration_bounds = array<i64: 2, 1>, scalar_prefetch = 0 : i64, scratch_operands = 2 : i64, tpu.core_type = #tpu.core_type<tc>, window_params = [{transform_indices = @transform_0, window_bounds = array<i64: 1, 3, 8, 128>}, {transform_indices = @transform_1, window_bounds = array<i64: 1, 3, 8, 128>}, {transform_indices = @transform_2, window_bounds = array<i64: 1, 1, 1>}]} {
    %c0_i32 = arith.constant 0 : i32
    %0 = arith.cmpi eq, %arg1, %c0_i32 : i32
    %1 = arith.extui %0 : i1 to i32
    %c0_i32_0 = arith.constant 0 : i32
    %2 = arith.cmpi ne, %1, %c0_i32_0 : i32
    scf.if %2 {
      %cst_87 = arith.constant 0.000000e+00 : f32
      %197 = vector.broadcast %cst_87 : f32 to vector<8x128xf32>
      %c0_88 = arith.constant 0 : index
      %c0_89 = arith.constant 0 : index
      %198 = vector.load %arg5[%c0_88, %c0_89] : memref<8x128xf32, #tpu.memory_space<vmem>>, vector<8x128xf32>
      tpu.vector_store %arg5[%c0_88, %c0_89], %197 {strides = array<i32>} : memref<8x128xf32, #tpu.memory_space<vmem>>, vector<8x128xf32>,
      %cst_90 = arith.constant 0.000000e+00 : f32
      %199 = vector.broadcast %cst_90 : f32 to vector<8x128xf32>
      %c0_91 = arith.constant 0 : index
      %c0_92 = arith.constant 0 : index
      %200 = vector.load %arg6[%c0_91, %c0_92] : memref<8x128xf32, #tpu.memory_space<vmem>>, vector<8x128xf32>
      tpu.vector_store %arg6[%c0_91, %c0_92], %199 {strides = array<i32>} : memref<8x128xf32, #tpu.memory_space<vmem>>, vector<8x128xf32>,
    } else {
    }
    %c0 = arith.constant 0 : index
    %c0_1 = arith.constant 0 : index
    %c0_2 = arith.constant 0 : index
    %c0_3 = arith.constant 0 : index
    %3 = vector.load %arg3[%c0, %c0_1, %c0_2, %c0_3] : memref<1x3x8x128xf32, #tpu.memory_space<vmem>>, vector<1x3x8x128xf32>
    %4 = vector.shape_cast %3 : vector<1x3x8x128xf32> to vector<3x8x128xf32>
    %c0_4 = arith.constant 0 : index
    %c0_5 = arith.constant 0 : index
    %c0_6 = arith.constant 0 : index
    %c0_7 = arith.constant 0 : index
    %5 = vector.load %arg2[%c0_4, %c0_5, %c0_6, %c0_7] : memref<1x3x8x128xf32, #tpu.memory_space<vmem>>, vector<1x3x8x128xf32>
    %6 = vector.shape_cast %5 : vector<1x3x8x128xf32> to vector<3x8x128xf32>
    %7 = vector.extract_strided_slice %4 {offsets = [0, 0, 0], sizes = [1, 8, 128], strides = [1, 1, 1]} : vector<3x8x128xf32> to vector<1x8x128xf32>
    %8 = vector.shape_cast %7 : vector<1x8x128xf32> to vector<8x128xf32>
    %9 = vector.extract_strided_slice %4 {offsets = [1, 0, 0], sizes = [1, 8, 128], strides = [1, 1, 1]} : vector<3x8x128xf32> to vector<1x8x128xf32>
    %10 = vector.shape_cast %9 : vector<1x8x128xf32> to vector<8x128xf32>
    %11 = vector.extract_strided_slice %4 {offsets = [2, 0, 0], sizes = [1, 8, 128], strides = [1, 1, 1]} : vector<3x8x128xf32> to vector<1x8x128xf32>
    %12 = vector.shape_cast %11 : vector<1x8x128xf32> to vector<8x128xf32>
    %13 = vector.extract_strided_slice %6 {offsets = [0, 0, 0], sizes = [1, 8, 128], strides = [1, 1, 1]} : vector<3x8x128xf32> to vector<1x8x128xf32>
    %14 = vector.shape_cast %13 : vector<1x8x128xf32> to vector<8x128xf32>
    %15 = vector.extract_strided_slice %6 {offsets = [1, 0, 0], sizes = [1, 8, 128], strides = [1, 1, 1]} : vector<3x8x128xf32> to vector<1x8x128xf32>
    %16 = vector.shape_cast %15 : vector<1x8x128xf32> to vector<8x128xf32>
    %17 = vector.extract_strided_slice %6 {offsets = [2, 0, 0], sizes = [1, 8, 128], strides = [1, 1, 1]} : vector<3x8x128xf32> to vector<1x8x128xf32>
    %18 = vector.shape_cast %17 : vector<1x8x128xf32> to vector<8x128xf32>
    %19 = tpu.iota {dimensions = array<i32: 1>} : vector<1x128xi32>
    %cst = arith.constant 0.000000e+00 : f32
    %20 = vector.broadcast %cst : f32 to vector<1x128xf32>
    %cst_8 = arith.constant 0.000000e+00 : f32
    %21 = vector.broadcast %cst_8 : f32 to vector<1x1xf32>
    %c0_i32_9 = arith.constant 0 : i32
    %c25_i32 = arith.constant 25 : i32
    %22 = arith.addi %c0_i32_9, %c25_i32 : i32
    %c1_i32 = arith.constant 1 : i32
    %23:2 = scf.for %arg7 = %c0_i32_9 to %22 step %c1_i32 iter_args(%arg8 = %20, %arg9 = %21) -> (vector<1x128xf32>, vector<1x1xf32>)  : i32 {
      %197 = arith.sitofp %arg7 : i32 to f32
      %cst_87 = arith.constant 4.000000e-02 : f32
      %198 = arith.mulf %197, %cst_87 : f32
      %199 = vector.broadcast %198 : f32 to vector<8x128xf32>
      %200 = arith.cmpf oge, %8, %199 : vector<8x128xf32>
      %201 = arith.extui %200 : vector<8x128xi1> to vector<8x128xi32>
      %202 = arith.sitofp %201 : vector<8x128xi32> to vector<8x128xf32>
      %cst_88 = arith.constant dense<0.000000e+00> : vector<128xf32>
      %203 = vector.multi_reduction <add>, %202, %cst_88 [0] : vector<8x128xf32> to vector<128xf32>
      %204 = vector.shape_cast %203 : vector<128xf32> to vector<1x128xf32>
      %cst_89 = arith.constant dense<0.000000e+00> : vector<1xf32>
      %205 = vector.multi_reduction <add>, %204, %cst_89 [1] : vector<1x128xf32> to vector<1xf32>
      %206 = vector.shape_cast %205 : vector<1xf32> to vector<1x1xf32>
      %c1_i32_90 = arith.constant 1 : i32
      %207 = arith.subi %arg7, %c1_i32_90 : i32
      %208 = vector.broadcast %207 : i32 to vector<1x128xi32>
      %209 = arith.cmpi eq, %19, %208 : vector<1x128xi32>
      %210 = arith.subf %arg9, %206 : vector<1x1xf32>
      %211 = vector.shape_cast %210 : vector<1x1xf32> to vector<1x1xf32>
      %212 = vector.broadcast %211 : vector<1x1xf32> to vector<1x128xf32>
      %213 = arith.select %209, %212, %arg8 : vector<1x128xi1>, vector<1x128xf32>
      scf.yield %213, %206 : vector<1x128xf32>, vector<1x1xf32>
    }
    %c25_i32_10 = arith.constant 25 : i32
    %cst_11 = arith.constant 1.000000e+00 : f32
    %24 = vector.broadcast %cst_11 : f32 to vector<8x128xf32>
    %25 = arith.cmpf ogt, %8, %24 : vector<8x128xf32>
    %26 = arith.extui %25 : vector<8x128xi1> to vector<8x128xi32>
    %27 = arith.sitofp %26 : vector<8x128xi32> to vector<8x128xf32>
    %cst_12 = arith.constant dense<0.000000e+00> : vector<128xf32>
    %28 = vector.multi_reduction <add>, %27, %cst_12 [0] : vector<8x128xf32> to vector<128xf32>
    %29 = vector.shape_cast %28 : vector<128xf32> to vector<1x128xf32>
    %cst_13 = arith.constant dense<0.000000e+00> : vector<1xf32>
    %30 = vector.multi_reduction <add>, %29, %cst_13 [1] : vector<1x128xf32> to vector<1xf32>
    %31 = vector.shape_cast %30 : vector<1xf32> to vector<1x1xf32>
    %c24_i32 = arith.constant 24 : i32
    %32 = vector.broadcast %c24_i32 : i32 to vector<1x128xi32>
    %33 = arith.cmpi eq, %19, %32 : vector<1x128xi32>
    %34 = arith.subf %23#1, %31 : vector<1x1xf32>
    %35 = vector.shape_cast %34 : vector<1x1xf32> to vector<1x1xf32>
    %36 = vector.broadcast %35 : vector<1x1xf32> to vector<1x128xf32>
    %37 = arith.select %33, %36, %23#0 : vector<1x128xi1>, vector<1x128xf32>
    %cst_14 = arith.constant dense<0.000000e+00> : vector<1xf32>
    %38 = vector.multi_reduction <add>, %37, %cst_14 [1] : vector<1x128xf32> to vector<1xf32>
    %39 = vector.shape_cast %38 : vector<1xf32> to vector<1x1xf32>
    %c25_i32_15 = arith.constant 25 : i32
    %40 = vector.broadcast %c25_i32_15 : i32 to vector<1x128xi32>
    %41 = arith.cmpi slt, %19, %40 : vector<1x128xi32>
    %cst_16 = arith.constant 4.000000e-02 : f32
    %42 = vector.broadcast %cst_16 : f32 to vector<1x1xf32>
    %43 = arith.mulf %39, %42 : vector<1x1xf32>
    %44 = vector.broadcast %43 : vector<1x1xf32> to vector<1x128xf32>
    %45 = arith.subf %37, %44 : vector<1x128xf32>
    %cst_17 = arith.constant 0.000000e+00 : f32
    %46 = vector.broadcast %cst_17 : f32 to vector<1x128xf32>
    %47 = arith.select %41, %45, %46 : vector<1x128xi1>, vector<1x128xf32>
    %cst_18 = arith.constant 0.000000e+00 : f32
    %48 = vector.broadcast %cst_18 : f32 to vector<1x128xf32>
    %cst_19 = arith.constant 0.000000e+00 : f32
    %49 = vector.broadcast %cst_19 : f32 to vector<1x1xf32>
    %c0_i32_20 = arith.constant 0 : i32
    %c25_i32_21 = arith.constant 25 : i32
    %50 = arith.addi %c0_i32_20, %c25_i32_21 : i32
    %c1_i32_22 = arith.constant 1 : i32
    %51:2 = scf.for %arg7 = %c0_i32_20 to %50 step %c1_i32_22 iter_args(%arg8 = %48, %arg9 = %49) -> (vector<1x128xf32>, vector<1x1xf32>)  : i32 {
      %197 = arith.sitofp %arg7 : i32 to f32
      %cst_87 = arith.constant 4.000000e-02 : f32
      %198 = arith.mulf %197, %cst_87 : f32
      %199 = vector.broadcast %198 : f32 to vector<8x128xf32>
      %200 = arith.cmpf oge, %10, %199 : vector<8x128xf32>
      %201 = arith.extui %200 : vector<8x128xi1> to vector<8x128xi32>
      %202 = arith.sitofp %201 : vector<8x128xi32> to vector<8x128xf32>
      %cst_88 = arith.constant dense<0.000000e+00> : vector<128xf32>
      %203 = vector.multi_reduction <add>, %202, %cst_88 [0] : vector<8x128xf32> to vector<128xf32>
      %204 = vector.shape_cast %203 : vector<128xf32> to vector<1x128xf32>
      %cst_89 = arith.constant dense<0.000000e+00> : vector<1xf32>
      %205 = vector.multi_reduction <add>, %204, %cst_89 [1] : vector<1x128xf32> to vector<1xf32>
      %206 = vector.shape_cast %205 : vector<1xf32> to vector<1x1xf32>
      %c1_i32_90 = arith.constant 1 : i32
      %207 = arith.subi %arg7, %c1_i32_90 : i32
      %208 = vector.broadcast %207 : i32 to vector<1x128xi32>
      %209 = arith.cmpi eq, %19, %208 : vector<1x128xi32>
      %210 = arith.subf %arg9, %206 : vector<1x1xf32>
      %211 = vector.shape_cast %210 : vector<1x1xf32> to vector<1x1xf32>
      %212 = vector.broadcast %211 : vector<1x1xf32> to vector<1x128xf32>
      %213 = arith.select %209, %212, %arg8 : vector<1x128xi1>, vector<1x128xf32>
      scf.yield %213, %206 : vector<1x128xf32>, vector<1x1xf32>
    }
    %c25_i32_23 = arith.constant 25 : i32
    %cst_24 = arith.constant 1.000000e+00 : f32
    %52 = vector.broadcast %cst_24 : f32 to vector<8x128xf32>
    %53 = arith.cmpf ogt, %10, %52 : vector<8x128xf32>
    %54 = arith.extui %53 : vector<8x128xi1> to vector<8x128xi32>
    %55 = arith.sitofp %54 : vector<8x128xi32> to vector<8x128xf32>
    %cst_25 = arith.constant dense<0.000000e+00> : vector<128xf32>
    %56 = vector.multi_reduction <add>, %55, %cst_25 [0] : vector<8x128xf32> to vector<128xf32>
    %57 = vector.shape_cast %56 : vector<128xf32> to vector<1x128xf32>
    %cst_26 = arith.constant dense<0.000000e+00> : vector<1xf32>
    %58 = vector.multi_reduction <add>, %57, %cst_26 [1] : vector<1x128xf32> to vector<1xf32>
    %59 = vector.shape_cast %58 : vector<1xf32> to vector<1x1xf32>
    %c24_i32_27 = arith.constant 24 : i32
    %60 = vector.broadcast %c24_i32_27 : i32 to vector<1x128xi32>
    %61 = arith.cmpi eq, %19, %60 : vector<1x128xi32>
    %62 = arith.subf %51#1, %59 : vector<1x1xf32>
    %63 = vector.shape_cast %62 : vector<1x1xf32> to vector<1x1xf32>
    %64 = vector.broadcast %63 : vector<1x1xf32> to vector<1x128xf32>
    %65 = arith.select %61, %64, %51#0 : vector<1x128xi1>, vector<1x128xf32>
    %cst_28 = arith.constant dense<0.000000e+00> : vector<1xf32>
    %66 = vector.multi_reduction <add>, %65, %cst_28 [1] : vector<1x128xf32> to vector<1xf32>
    %67 = vector.shape_cast %66 : vector<1xf32> to vector<1x1xf32>
    %c25_i32_29 = arith.constant 25 : i32
    %68 = vector.broadcast %c25_i32_29 : i32 to vector<1x128xi32>
    %69 = arith.cmpi slt, %19, %68 : vector<1x128xi32>
    %cst_30 = arith.constant 4.000000e-02 : f32
    %70 = vector.broadcast %cst_30 : f32 to vector<1x1xf32>
    %71 = arith.mulf %67, %70 : vector<1x1xf32>
    %72 = vector.broadcast %71 : vector<1x1xf32> to vector<1x128xf32>
    %73 = arith.subf %65, %72 : vector<1x128xf32>
    %cst_31 = arith.constant 0.000000e+00 : f32
    %74 = vector.broadcast %cst_31 : f32 to vector<1x128xf32>
    %75 = arith.select %69, %73, %74 : vector<1x128xi1>, vector<1x128xf32>
    %cst_32 = arith.constant 0.000000e+00 : f32
    %76 = vector.broadcast %cst_32 : f32 to vector<1x128xf32>
    %cst_33 = arith.constant 0.000000e+00 : f32
    %77 = vector.broadcast %cst_33 : f32 to vector<1x1xf32>
    %c0_i32_34 = arith.constant 0 : i32
    %c25_i32_35 = arith.constant 25 : i32
    %78 = arith.addi %c0_i32_34, %c25_i32_35 : i32
    %c1_i32_36 = arith.constant 1 : i32
    %79:2 = scf.for %arg7 = %c0_i32_34 to %78 step %c1_i32_36 iter_args(%arg8 = %76, %arg9 = %77) -> (vector<1x128xf32>, vector<1x1xf32>)  : i32 {
      %197 = arith.sitofp %arg7 : i32 to f32
      %cst_87 = arith.constant 4.000000e-02 : f32
      %198 = arith.mulf %197, %cst_87 : f32
      %199 = vector.broadcast %198 : f32 to vector<8x128xf32>
      %200 = arith.cmpf oge, %12, %199 : vector<8x128xf32>
      %201 = arith.extui %200 : vector<8x128xi1> to vector<8x128xi32>
      %202 = arith.sitofp %201 : vector<8x128xi32> to vector<8x128xf32>
      %cst_88 = arith.constant dense<0.000000e+00> : vector<128xf32>
      %203 = vector.multi_reduction <add>, %202, %cst_88 [0] : vector<8x128xf32> to vector<128xf32>
      %204 = vector.shape_cast %203 : vector<128xf32> to vector<1x128xf32>
      %cst_89 = arith.constant dense<0.000000e+00> : vector<1xf32>
      %205 = vector.multi_reduction <add>, %204, %cst_89 [1] : vector<1x128xf32> to vector<1xf32>
      %206 = vector.shape_cast %205 : vector<1xf32> to vector<1x1xf32>
      %c1_i32_90 = arith.constant 1 : i32
      %207 = arith.subi %arg7, %c1_i32_90 : i32
      %208 = vector.broadcast %207 : i32 to vector<1x128xi32>
      %209 = arith.cmpi eq, %19, %208 : vector<1x128xi32>
      %210 = arith.subf %arg9, %206 : vector<1x1xf32>
      %211 = vector.shape_cast %210 : vector<1x1xf32> to vector<1x1xf32>
      %212 = vector.broadcast %211 : vector<1x1xf32> to vector<1x128xf32>
      %213 = arith.select %209, %212, %arg8 : vector<1x128xi1>, vector<1x128xf32>
      scf.yield %213, %206 : vector<1x128xf32>, vector<1x1xf32>
    }
    %c25_i32_37 = arith.constant 25 : i32
    %cst_38 = arith.constant 1.000000e+00 : f32
    %80 = vector.broadcast %cst_38 : f32 to vector<8x128xf32>
    %81 = arith.cmpf ogt, %12, %80 : vector<8x128xf32>
    %82 = arith.extui %81 : vector<8x128xi1> to vector<8x128xi32>
    %83 = arith.sitofp %82 : vector<8x128xi32> to vector<8x128xf32>
    %cst_39 = arith.constant dense<0.000000e+00> : vector<128xf32>
    %84 = vector.multi_reduction <add>, %83, %cst_39 [0] : vector<8x128xf32> to vector<128xf32>
    %85 = vector.shape_cast %84 : vector<128xf32> to vector<1x128xf32>
    %cst_40 = arith.constant dense<0.000000e+00> : vector<1xf32>
    %86 = vector.multi_reduction <add>, %85, %cst_40 [1] : vector<1x128xf32> to vector<1xf32>
    %87 = vector.shape_cast %86 : vector<1xf32> to vector<1x1xf32>
    %c24_i32_41 = arith.constant 24 : i32
    %88 = vector.broadcast %c24_i32_41 : i32 to vector<1x128xi32>
    %89 = arith.cmpi eq, %19, %88 : vector<1x128xi32>
    %90 = arith.subf %79#1, %87 : vector<1x1xf32>
    %91 = vector.shape_cast %90 : vector<1x1xf32> to vector<1x1xf32>
    %92 = vector.broadcast %91 : vector<1x1xf32> to vector<1x128xf32>
    %93 = arith.select %89, %92, %79#0 : vector<1x128xi1>, vector<1x128xf32>
    %cst_42 = arith.constant dense<0.000000e+00> : vector<1xf32>
    %94 = vector.multi_reduction <add>, %93, %cst_42 [1] : vector<1x128xf32> to vector<1xf32>
    %95 = vector.shape_cast %94 : vector<1xf32> to vector<1x1xf32>
    %c25_i32_43 = arith.constant 25 : i32
    %96 = vector.broadcast %c25_i32_43 : i32 to vector<1x128xi32>
    %97 = arith.cmpi slt, %19, %96 : vector<1x128xi32>
    %cst_44 = arith.constant 4.000000e-02 : f32
    %98 = vector.broadcast %cst_44 : f32 to vector<1x1xf32>
    %99 = arith.mulf %95, %98 : vector<1x1xf32>
    %100 = vector.broadcast %99 : vector<1x1xf32> to vector<1x128xf32>
    %101 = arith.subf %93, %100 : vector<1x128xf32>
    %cst_45 = arith.constant 0.000000e+00 : f32
    %102 = vector.broadcast %cst_45 : f32 to vector<1x128xf32>
    %103 = arith.select %97, %101, %102 : vector<1x128xi1>, vector<1x128xf32>
    %104 = arith.mulf %47, %47 : vector<1x128xf32>
    %cst_46 = arith.constant dense<0.000000e+00> : vector<1xf32>
    %105 = vector.multi_reduction <add>, %104, %cst_46 [1] : vector<1x128xf32> to vector<1xf32>
    %106 = vector.shape_cast %105 : vector<1xf32> to vector<1x1xf32>
    %107 = arith.mulf %75, %75 : vector<1x128xf32>
    %cst_47 = arith.constant dense<0.000000e+00> : vector<1xf32>
    %108 = vector.multi_reduction <add>, %107, %cst_47 [1] : vector<1x128xf32> to vector<1xf32>
    %109 = vector.shape_cast %108 : vector<1xf32> to vector<1x1xf32>
    %110 = arith.mulf %103, %103 : vector<1x128xf32>
    %cst_48 = arith.constant dense<0.000000e+00> : vector<1xf32>
    %111 = vector.multi_reduction <add>, %110, %cst_48 [1] : vector<1x128xf32> to vector<1xf32>
    %112 = vector.shape_cast %111 : vector<1xf32> to vector<1x1xf32>
    %113 = arith.mulf %47, %75 : vector<1x128xf32>
    %cst_49 = arith.constant dense<0.000000e+00> : vector<1xf32>
    %114 = vector.multi_reduction <add>, %113, %cst_49 [1] : vector<1x128xf32> to vector<1xf32>
    %115 = vector.shape_cast %114 : vector<1xf32> to vector<1x1xf32>
    %116 = arith.mulf %106, %109 : vector<1x1xf32>
    %cst_50 = arith.constant 9.99999996E-13 : f32
    %117 = vector.broadcast %cst_50 : f32 to vector<1x1xf32>
    %118 = arith.maximumf %116, %117 : vector<1x1xf32>
    %119 = math.rsqrt %118 : vector<1x1xf32>
    %120 = arith.mulf %115, %119 : vector<1x1xf32>
    %121 = arith.mulf %47, %103 : vector<1x128xf32>
    %cst_51 = arith.constant dense<0.000000e+00> : vector<1xf32>
    %122 = vector.multi_reduction <add>, %121, %cst_51 [1] : vector<1x128xf32> to vector<1xf32>
    %123 = vector.shape_cast %122 : vector<1xf32> to vector<1x1xf32>
    %124 = arith.mulf %106, %112 : vector<1x1xf32>
    %cst_52 = arith.constant 9.99999996E-13 : f32
    %125 = vector.broadcast %cst_52 : f32 to vector<1x1xf32>
    %126 = arith.maximumf %124, %125 : vector<1x1xf32>
    %127 = math.rsqrt %126 : vector<1x1xf32>
    %128 = arith.mulf %123, %127 : vector<1x1xf32>
    %129 = arith.mulf %75, %103 : vector<1x128xf32>
    %cst_53 = arith.constant dense<0.000000e+00> : vector<1xf32>
    %130 = vector.multi_reduction <add>, %129, %cst_53 [1] : vector<1x128xf32> to vector<1xf32>
    %131 = vector.shape_cast %130 : vector<1xf32> to vector<1x1xf32>
    %132 = arith.mulf %109, %112 : vector<1x1xf32>
    %cst_54 = arith.constant 9.99999996E-13 : f32
    %133 = vector.broadcast %cst_54 : f32 to vector<1x1xf32>
    %134 = arith.maximumf %132, %133 : vector<1x1xf32>
    %135 = math.rsqrt %134 : vector<1x1xf32>
    %136 = arith.mulf %131, %135 : vector<1x1xf32>
    %137 = arith.subf %14, %8 : vector<8x128xf32>
    %138 = arith.subf %16, %10 : vector<8x128xf32>
    %139 = arith.subf %18, %12 : vector<8x128xf32>
    %c0_55 = arith.constant 0 : index
    %c0_56 = arith.constant 0 : index
    %140 = vector.load %arg5[%c0_55, %c0_56] : memref<8x128xf32, #tpu.memory_space<vmem>>, vector<8x128xf32>
    %141 = math.absf %137 : vector<8x128xf32>
    %142 = vector.shape_cast %141 : vector<8x128xf32> to vector<1x8x128xf32>
    %cst_57 = arith.constant dense<0.000000e+00> : vector<8x128xf32>
    %143 = vector.multi_reduction <add>, %142, %cst_57 [0] : vector<1x8x128xf32> to vector<8x128xf32>
    %144 = arith.addf %140, %143 : vector<8x128xf32>
    %c0_58 = arith.constant 0 : index
    %c0_59 = arith.constant 0 : index
    %145 = vector.load %arg5[%c0_58, %c0_59] : memref<8x128xf32, #tpu.memory_space<vmem>>, vector<8x128xf32>
    tpu.vector_store %arg5[%c0_58, %c0_59], %144 {strides = array<i32>} : memref<8x128xf32, #tpu.memory_space<vmem>>, vector<8x128xf32>,
    %c0_60 = arith.constant 0 : index
    %c0_61 = arith.constant 0 : index
    %146 = vector.load %arg5[%c0_60, %c0_61] : memref<8x128xf32, #tpu.memory_space<vmem>>, vector<8x128xf32>
    %147 = math.absf %138 : vector<8x128xf32>
    %148 = vector.shape_cast %147 : vector<8x128xf32> to vector<1x8x128xf32>
    %cst_62 = arith.constant dense<0.000000e+00> : vector<8x128xf32>
    %149 = vector.multi_reduction <add>, %148, %cst_62 [0] : vector<1x8x128xf32> to vector<8x128xf32>
    %150 = arith.addf %146, %149 : vector<8x128xf32>
    %c0_63 = arith.constant 0 : index
    %c0_64 = arith.constant 0 : index
    %151 = vector.load %arg5[%c0_63, %c0_64] : memref<8x128xf32, #tpu.memory_space<vmem>>, vector<8x128xf32>
    tpu.vector_store %arg5[%c0_63, %c0_64], %150 {strides = array<i32>} : memref<8x128xf32, #tpu.memory_space<vmem>>, vector<8x128xf32>,
    %c0_65 = arith.constant 0 : index
    %c0_66 = arith.constant 0 : index
    %152 = vector.load %arg5[%c0_65, %c0_66] : memref<8x128xf32, #tpu.memory_space<vmem>>, vector<8x128xf32>
    %153 = math.absf %139 : vector<8x128xf32>
    %154 = vector.shape_cast %153 : vector<8x128xf32> to vector<1x8x128xf32>
    %cst_67 = arith.constant dense<0.000000e+00> : vector<8x128xf32>
    %155 = vector.multi_reduction <add>, %154, %cst_67 [0] : vector<1x8x128xf32> to vector<8x128xf32>
    %156 = arith.addf %152, %155 : vector<8x128xf32>
    %c0_68 = arith.constant 0 : index
    %c0_69 = arith.constant 0 : index
    %157 = vector.load %arg5[%c0_68, %c0_69] : memref<8x128xf32, #tpu.memory_space<vmem>>, vector<8x128xf32>
    tpu.vector_store %arg5[%c0_68, %c0_69], %156 {strides = array<i32>} : memref<8x128xf32, #tpu.memory_space<vmem>>, vector<8x128xf32>,
    %158 = vector.broadcast %120 : vector<1x1xf32> to vector<8x128xf32>
    %159 = arith.mulf %158, %138 : vector<8x128xf32>
    %160 = arith.addf %137, %159 : vector<8x128xf32>
    %161 = vector.broadcast %128 : vector<1x1xf32> to vector<8x128xf32>
    %162 = arith.mulf %161, %139 : vector<8x128xf32>
    %163 = arith.addf %160, %162 : vector<8x128xf32>
    %c0_70 = arith.constant 0 : index
    %c0_71 = arith.constant 0 : index
    %164 = vector.load %arg6[%c0_70, %c0_71] : memref<8x128xf32, #tpu.memory_space<vmem>>, vector<8x128xf32>
    %165 = math.absf %163 : vector<8x128xf32>
    %166 = vector.shape_cast %165 : vector<8x128xf32> to vector<1x8x128xf32>
    %cst_72 = arith.constant dense<0.000000e+00> : vector<8x128xf32>
    %167 = vector.multi_reduction <add>, %166, %cst_72 [0] : vector<1x8x128xf32> to vector<8x128xf32>
    %168 = arith.addf %164, %167 : vector<8x128xf32>
    %c0_73 = arith.constant 0 : index
    %c0_74 = arith.constant 0 : index
    %169 = vector.load %arg6[%c0_73, %c0_74] : memref<8x128xf32, #tpu.memory_space<vmem>>, vector<8x128xf32>
    tpu.vector_store %arg6[%c0_73, %c0_74], %168 {strides = array<i32>} : memref<8x128xf32, #tpu.memory_space<vmem>>, vector<8x128xf32>,
    %170 = vector.broadcast %120 : vector<1x1xf32> to vector<8x128xf32>
    %171 = arith.mulf %170, %137 : vector<8x128xf32>
    %172 = arith.addf %171, %138 : vector<8x128xf32>
    %173 = vector.broadcast %136 : vector<1x1xf32> to vector<8x128xf32>
    %174 = arith.mulf %173, %139 : vector<8x128xf32>
    %175 = arith.addf %172, %174 : vector<8x128xf32>
    %c0_75 = arith.constant 0 : index
    %c0_76 = arith.constant 0 : index
    %176 = vector.load %arg6[%c0_75, %c0_76] : memref<8x128xf32, #tpu.memory_space<vmem>>, vector<8x128xf32>
    %177 = math.absf %175 : vector<8x128xf32>
    %178 = vector.shape_cast %177 : vector<8x128xf32> to vector<1x8x128xf32>
    %cst_77 = arith.constant dense<0.000000e+00> : vector<8x128xf32>
    %179 = vector.multi_reduction <add>, %178, %cst_77 [0] : vector<1x8x128xf32> to vector<8x128xf32>
    %180 = arith.addf %176, %179 : vector<8x128xf32>
    %c0_78 = arith.constant 0 : index
    %c0_79 = arith.constant 0 : index
    %181 = vector.load %arg6[%c0_78, %c0_79] : memref<8x128xf32, #tpu.memory_space<vmem>>, vector<8x128xf32>
    tpu.vector_store %arg6[%c0_78, %c0_79], %180 {strides = array<i32>} : memref<8x128xf32, #tpu.memory_space<vmem>>, vector<8x128xf32>,
    %182 = vector.broadcast %128 : vector<1x1xf32> to vector<8x128xf32>
    %183 = arith.mulf %182, %137 : vector<8x128xf32>
    %184 = vector.broadcast %136 : vector<1x1xf32> to vector<8x128xf32>
    %185 = arith.mulf %184, %138 : vector<8x128xf32>
    %186 = arith.addf %183, %185 : vector<8x128xf32>
    %187 = arith.addf %186, %139 : vector<8x128xf32>
    %c0_80 = arith.constant 0 : index
    %c0_81 = arith.constant 0 : index
    %188 = vector.load %arg6[%c0_80, %c0_81] : memref<8x128xf32, #tpu.memory_space<vmem>>, vector<8x128xf32>
    %189 = math.absf %187 : vector<8x128xf32>
    %190 = vector.shape_cast %189 : vector<8x128xf32> to vector<1x8x128xf32>
    %cst_82 = arith.constant dense<0.000000e+00> : vector<8x128xf32>
    %191 = vector.multi_reduction <add>, %190, %cst_82 [0] : vector<1x8x128xf32> to vector<8x128xf32>
    %192 = arith.addf %188, %191 : vector<8x128xf32>
    %c0_83 = arith.constant 0 : index
    %c0_84 = arith.constant 0 : index
    %193 = vector.load %arg6[%c0_83, %c0_84] : memref<8x128xf32, #tpu.memory_space<vmem>>, vector<8x128xf32>
    tpu.vector_store %arg6[%c0_83, %c0_84], %192 {strides = array<i32>} : memref<8x128xf32, #tpu.memory_space<vmem>>, vector<8x128xf32>,
    %c0_i32_85 = arith.constant 0 : i32
    %194 = arith.cmpi eq, %arg1, %c0_i32_85 : i32
    %195 = arith.extui %194 : i1 to i32
    %c0_i32_86 = arith.constant 0 : i32
    %196 = arith.cmpi ne, %195, %c0_i32_86 : i32
    scf.if %196 {
      %c0_87 = arith.constant 0 : index
      %c0_88 = arith.constant 0 : index
      %197 = vector.load %arg5[%c0_87, %c0_88] : memref<8x128xf32, #tpu.memory_space<vmem>>, vector<8x128xf32>
      %198 = vector.shape_cast %197 : vector<8x128xf32> to vector<1x8x128xf32>
      %cst_89 = arith.constant dense<0.000000e+00> : vector<1xf32>
      %199 = vector.multi_reduction <add>, %198, %cst_89 [1, 2] : vector<1x8x128xf32> to vector<1xf32>
      %200 = vector.shape_cast %199 : vector<1xf32> to vector<1x1x1xf32>
      %201 = vector.extract %200[0, 0, 0] : f32 from vector<1x1x1xf32>
      %202 = vector.broadcast %201 : f32 to vector<1x1xf32>
      %c0_90 = arith.constant 0 : index
      %c0_91 = arith.constant 0 : index
      %203 = vector.load %arg6[%c0_90, %c0_91] : memref<8x128xf32, #tpu.memory_space<vmem>>, vector<8x128xf32>
      %204 = vector.shape_cast %203 : vector<8x128xf32> to vector<1x8x128xf32>
      %cst_92 = arith.constant dense<0.000000e+00> : vector<1xf32>
      %205 = vector.multi_reduction <add>, %204, %cst_92 [1, 2] : vector<1x8x128xf32> to vector<1xf32>
      %206 = vector.shape_cast %205 : vector<1xf32> to vector<1x1x1xf32>
      %207 = vector.extract %206[0, 0, 0] : f32 from vector<1x1x1xf32>
      %208 = vector.broadcast %207 : f32 to vector<1x1xf32>
      %cst_93 = arith.constant 8.000000e-01 : f32
      %209 = vector.broadcast %cst_93 : f32 to vector<1x1xf32>
      %210 = arith.mulf %209, %202 : vector<1x1xf32>
      %cst_94 = arith.constant 2.000000e-01 : f32
      %211 = vector.broadcast %cst_94 : f32 to vector<1x1xf32>
      %212 = arith.mulf %211, %208 : vector<1x1xf32>
      %213 = arith.addf %210, %212 : vector<1x1xf32>
      %cst_95 = arith.constant 6.51041686E-4 : f32
      %214 = vector.broadcast %cst_95 : f32 to vector<1x1xf32>
      %215 = arith.mulf %213, %214 : vector<1x1xf32>
      %216 = vector.shape_cast %215 : vector<1x1xf32> to vector<1x1x1xf32>
      %c0_96 = arith.constant 0 : index
      %c0_97 = arith.constant 0 : index
      %c0_98 = arith.constant 0 : index
      %217 = vector.load %arg4[%c0_96, %c0_97, %c0_98] : memref<1x1x1xf32, #tpu.memory_space<vmem>>, vector<1x1x1xf32>
      tpu.vector_store %arg4[%c0_96, %c0_97, %c0_98], %216 {strides = array<i32>} : memref<1x1x1xf32, #tpu.memory_space<vmem>>, vector<1x1x1xf32>,
    } else {
    }
    return
  }
  func.func @transform_0(%arg0: i32, %arg1: i32) -> (i32, i32, i32, i32) {
    %c1_i32 = arith.constant 1 : i32
    %0 = arith.muli %arg0, %c1_i32 : i32
    %1 = arith.addi %0, %arg1 : i32
    %c0_i32 = arith.constant 0 : i32
    %c0_i32_0 = arith.constant 0 : i32
    %c0_i32_1 = arith.constant 0 : i32
    %c0_i32_2 = arith.constant 0 : i32
    return %1, %c0_i32, %c0_i32_0, %c0_i32_1 : i32, i32, i32, i32
  }
  func.func @transform_1(%arg0: i32, %arg1: i32) -> (i32, i32, i32, i32) {
    %c1_i32 = arith.constant 1 : i32
    %0 = arith.muli %arg0, %c1_i32 : i32
    %1 = arith.addi %0, %arg1 : i32
    %c0_i32 = arith.constant 0 : i32
    %c0_i32_0 = arith.constant 0 : i32
    %c0_i32_1 = arith.constant 0 : i32
    %c0_i32_2 = arith.constant 0 : i32
    return %1, %c0_i32, %c0_i32_0, %c0_i32_1 : i32, i32, i32, i32
  }
  func.func @transform_2(%arg0: i32, %arg1: i32) -> (i32, i32, i32) {
    %c0_i32 = arith.constant 0 : i32
    %c0_i32_0 = arith.constant 0 : i32
    %c0_i32_1 = arith.constant 0 : i32
    return %arg0, %c0_i32, %c0_i32_0 : i32, i32, i32
  }
}

</mosaic_0001>

<bundles_post_ra>
// kernel: tpu_custom_call.1
= control target key start
LH: loop header
LB: loop body
LE: loop exit
PB: predicated region body
PF: predicated region fallthrough
CT: control target
= control target key end

     0   :  { %7 = vsyncpa [#allocation5], 0  ;;  %s1239_s0 = inlined_call_operand.hbm [shape: f32[2,3,8,128], index: 0, kind: input, shape index: {}]   ;;  %s1240_s1 = inlined_call_operand.hbm [shape: f32[2,3,8,128], index: 1, kind: input, shape index: {}]   ;;  %s1241_s2 = inlined_call_operand.vmem [shape: f32[2,1,1], index: 2, kind: output, shape index: {}]  }
   0x1   :  { %9 = vsyncpa [#allocation5 + $0x1], 0 }
   0x2   :  { %10 = vsyncpa [#allocation7], 0 }
   0x3   :  { %12 = vsyncpa [#allocation7 + $0x1], 0  ;;  %s984_s9 = smov 0   ;;  %s986_s10 = smov 0  }
   0x4   :  { %s988_s11 = smov 0   ;;  %s990_s12 = smov 0  }
   0x5   :  { %s992_s13 = smov 0   ;;  %s994_s14 = smov 0  }
   0x6 LB: > { %s602_s15 = sadd.s32 4294967295, %s923_s14   ;;  %s30_s16 = sadd.s32 1, %s919_s13  ;;  %s923_s14 = sphi %s994_s14, %s18_s14   ;;  %s919_s13 = sphi %s992_s13, %s1251_s13   ;;  %s915_s12 = sphi %s990_s12, %s1250_s12   ;;  %s911_s11 = sphi %s988_s11, %s1249_s11   ;;  %s907_s10 = sphi %s986_s10, %s1248_s10   ;;  %s903_s9 = sphi %s984_s9, %s1247_s9  }
   0x7   : > { %p32_p0 = scmp.ge.s32.totalorder %s30_s16, 2  ;;  %s39_s17 = sadd.s32 1, %s911_s11 }
   0x8   : > { %p46_p1 = scmp.ne.s32.totalorder %s911_s11, %s907_s10  ;;  %p47_p2 = scmp.eq.s32.totalorder %s923_s14, 0 }
   0x9   : > { %s1253_s16 = smov (%p32_p0, %s30_s16), 0  ;;  %p52_p4 = scmp.ne.s32.totalorder %s907_s10, %s903_s9 }
   0xa   : > { %p48_p3 = por %p47_p2, %p46_p1  ;;  %s36_s18 = ssub.s32 %s919_s13, %s1253_s16 }
   0xb   : > { %p53_p5 = scmp.eq.s32.totalorder %s602_s15, 0  ;;  %p37_p6 = scmp.eq.s32.totalorder %s36_s18, 0 }
   0xc   : > { %p640_p8 = scmp.lt.s32.totalorder %s923_s14, 2  ;;  %s1032_s21 = sand.u32 1, %s911_s11  }
   0xd   : > { %p1023_p7 = por %p53_p5, %p52_p4  ;;  %s621_s22 = smul.u32 384, %s919_s13 }
   0xe   : > { %s1029_s20 = scalar_select %p37_p6, %s911_s11, %s39_s17  }
   0xf   : > { %s1243_s19 = scalar_select %p1023_p7, 1, 0 }
  0x10   : > { %s620_s23 = smul.u32 24, %s1032_s21  ;;  %s1041_s26 = scalar_lea.hbm %s1239_s0, %s621_s22 }
  0x11   : > { %p1043_p9 = pnand %p640_p8, %p48_p3  ;;  %s131_s30 = scalar_lea.sflag [#allocation5], %s1032_s21 }
  0x12   : > { %s134_s28 = scalar_lea.vmem [#allocation4], %s620_s23  ;;  %s773_s3 = scalar_lea.hbm %s1041_s26, 384 }
  0x13   : > { %s142_s29 = sshll.u32 %s134_s28, 4  ;;  %p774_p10 = scmp.ne.s32.totalorder %s1041_s26, %s773_s3  ;;  %s1049_s29 = int_to_ptr.vmem [resolvable:$true] %s142_s29 }
  0x14   : > { %p775_p11 = pneg %p1043_p9  ;;  %s778_s6 = scalar_lea.hbm %s1239_s0, 768 }
  0x15   : > { %p779_p0 = scmp.lt.u32.totalorder %s1041_s26, %s1239_s0  ;;  %p780_p1 = scmp.lt.u32.totalorder %s778_s6, %s773_s3 }
  0x16   : > { %p776_p12 = pnand %p775_p11, %p774_p10  ;;  %p782_p3 = scmp.lt.u32.totalorder %s773_s3, %s1041_s26 }
  0x17   : > { %p781_p2 = por %p780_p1, %p779_p0 }
  0x18   : > { %p777_p13 = pneg %p776_p12 }
  0x19   : > { %p783_p4 = por %p782_p3, %p781_p2 }
  0x1b   : > { %p784_p5 = pnand %p783_p4, %p777_p13 }
  0x1d   : > { %787 = shalt.err (!%p784_p5)
}
  0x1e   : > { %s788_s9 = scalar_lea.vmem %s1049_s29, 384  ;;  %s961_s15 = smov [#allocation4]  }
  0x1f   : > { %p789_p6 = scmp.ne.s32.totalorder %s1049_s29, %s788_s9  ;;  %s793_s17 = sshll.u32 %s961_s15, 4  ;;  %s794_s17 = int_to_ptr.vmem [resolvable:$false] %s793_s17 }
  0x20   : > { %s795_s18 = scalar_lea.vmem %s794_s17, 768  ;;  %p796_p12 = scmp.lt.s32.totalorder %s1049_s29, %s794_s17 }
  0x21   : > { %p791_p8 = pnand %p789_p6, %p775_p11  ;;  %p797_p0 = scmp.lt.s32.totalorder %s795_s18, %s788_s9 }
  0x23   : > { %p792_p10 = pneg %p791_p8  ;;  %p798_p1 = por %p797_p0, %p796_p12 }
  0x25   : > { %p799_p2 = pnand %p798_p1, %p792_p10 }
  0x27   : > { %802 = shalt.err (!%p799_p2)
}
  0x28   : > { %s962_s24 = smov 128   ;;  %s963_s25 = smov 8  }
  0x29   : > { %636 = dma.hbm_to_vmem [thread:$0]  (!%p1043_p9), %s1041_s26, 384, %s1049_s29, %s131_s30, %s962_s24, %s962_s24, %s963_s25  }
  0x2a   : > { %p608_p13 = scmp.ge.s32.totalorder %s923_s14, 1  ;;  %p172_p3 = scmp.lt.s32.totalorder %s923_s14, 3 }
  0x2b   : > { %s1093_s5 = scalar_lea.hbm %s1240_s1, %s621_s22  ;;  %s156_s6 = scalar_lea.vmem [#allocation6], %s620_s23 }
  0x2c   : > { %p1084_p4 = pnand %p608_p13, %p172_p3  ;;  %s164_s7 = sshll.u32 %s156_s6, 4  ;;  %s1097_s7 = int_to_ptr.vmem [resolvable:$true] %s164_s7 }
  0x2d   : > { %s153_s26 = scalar_lea.sflag [#allocation7], %s1032_s21  ;;  %s803_s29 = scalar_lea.hbm %s1093_s5, 384 }
  0x2e   : > { %p804_p5 = scmp.ne.s32.totalorder %s1093_s5, %s803_s29  ;;  %s808_s22 = scalar_lea.hbm %s1240_s1, 768 }
  0x2f   : > { %p809_p10 = scmp.lt.u32.totalorder %s1093_s5, %s1240_s1  ;;  %p810_p12 = scmp.lt.u32.totalorder %s808_s22, %s803_s29 }
  0x30   : > { %p806_p6 = pnand %p804_p5, %p775_p11  ;;  %p812_p1 = scmp.lt.u32.totalorder %s803_s29, %s1093_s5 }
  0x31   : > { %p811_p0 = por %p810_p12, %p809_p10 }
  0x32   : > { %p807_p8 = pneg %p806_p6 }
  0x33   : > { %p813_p2 = por %p812_p1, %p811_p0 }
  0x35   : > { %p814_p13 = pnand %p813_p2, %p807_p8 }
  0x37   : > { %817 = shalt.err (!%p814_p13)
}
  0x38   : > { %s818_s23 = scalar_lea.vmem %s1097_s7, 384  ;;  %s964_s17 = smov [#allocation6]  }
  0x39   : > { %p819_p3 = scmp.ne.s32.totalorder %s1097_s7, %s818_s23  ;;  %s823_s18 = sshll.u32 %s964_s17, 4  ;;  %s824_s18 = int_to_ptr.vmem [resolvable:$false] %s823_s18 }
  0x3a   : > { %s825_s3 = scalar_lea.vmem %s824_s18, 768  ;;  %p826_p7 = scmp.lt.s32.totalorder %s1097_s7, %s824_s18 }
  0x3b   : > { %p821_p5 = pnand %p819_p3, %p775_p11  ;;  %p827_p10 = scmp.lt.s32.totalorder %s825_s3, %s818_s23 }
  0x3d   : > { %p822_p6 = pneg %p821_p5  ;;  %p828_p12 = por %p827_p10, %p826_p7 }
  0x3f   : > { %p829_p0 = pnand %p828_p12, %p822_p6 }
  0x41   : > { %832 = shalt.err (!%p829_p0)
}
  0x42   : > { %639 = dma.hbm_to_vmem [thread:$0]  (!%p1043_p9), %s1093_s5, 384, %s1097_s7, %s153_s26, %s962_s24, %s962_s24, %s963_s25  }
  0x43   : > { %176 = sbr.rel (%p1084_p4) target bundleno = 1411 (0x583), region = 28  ;;  %s178_s4 = sand.u32 (!%p1084_p4), 1, %s907_s10  }
  0x44   : > { %s624_s6 = smul.u32 (!%p1084_p4), 24, %s178_s4  ;;  %s179_s29 = scalar_lea.sflag (!%p1084_p4), [#allocation5], %s178_s4 }
  0x45   : > { %p1246_p7 = scmp.ne.s32.totalorder (!%p1084_p4), %s1243_s19, 0 }
  0x46   : > { %s182_s30 = scalar_lea.vmem (!%p1084_p4), [#allocation4], %s624_s6 }
  0x4a   : > { %894 = dma.done.wait (%p1246_p7), %s179_s29, 384  }
  0x4b   : > { %896 = vsyncadd (%p1246_p7), %s179_s29, 4294966912  ;;  %s188_s27 = scalar_lea.sflag [#allocation7], %s178_s4  ;;  %s191_s21 = scalar_lea.vmem [#allocation6], %s624_s6 }
  0x4c   : > { %898 = dma.done.wait (%p1246_p7), %s188_s27, 384  }
  0x4d   : > { %900 = vsyncadd (%p1246_p7), %s188_s27, 4294966912  ;;  %p217_p9 = scmp.lt.s32.totalorder %s915_s12, 1  ;;  %v232_v0 = vlaneseq  ;;  %v965_v1 = vmov 0.0   ;;  %v1151_v3 = vld [vmem:[%s191_s21] sm:$0xff]  ;;  %v1153_v4 = vld [vmem:[%s191_s21 + $0x8] sm:$0xff]  ;;  %v925_v9 = vmov 0.0  }
  0x4e   : > { %224 = vst [vmem:[#allocation2] sm:$0xff] %v965_v1  ;;  %225 = vst [vmem:[#allocation3] sm:$0xff] %v965_v1  ;;  %v1155_v5 = vld [vmem:[%s191_s21 + $0x10] sm:$0xff]  ;;  %v1159_v7 = vld [vmem:[%s182_s30 + $0x8] sm:$0xff]  ;;  %v929_v10 = vmov 0.0   ;;  %s1163_s19 = smov 0  }
  0x4f   : > { %s1255_s12 = smov (!%p217_p9, %s915_s12), 1  ;;  %v1145_v2 = vand.u32 127, %v232_v0  ;;  %v1157_v6 = vld [vmem:[%s182_s30] sm:$0xff]  ;;  %v1161_v8 = vld [vmem:[%s182_s30 + $0x10] sm:$0xff] }
  0x50   : > { %s219_s28 = scalar_lea.vmem %s1241_s2, %s1255_s12 }
  0x51 LB: >> { %s242_s5 = scvt.s32.f32 %s935_s19  ;;  %v966_v12 = vmov 0.0   ;;  %s610_s26 = sadd.s32 4294967295, %s935_s19  ;;  %s935_s19 = sphi %s1163_s19, %s239_s19   ;;  %v931_v10 = vphi %v929_v10, %v930_v10   ;;  %v927_v9 = vphi %v925_v9, %v926_v9  }
  0x52   : >> { %v257_v20 = vstv %s610_s26  ;;  %s239_s19 = sadd.s32 1, %s935_s19  }
  0x53   : >> { %s243_s7 = smul.f32 0.04, %s242_s5  ;;  %vm258_vm1 = vcmp.eq.s32.totalorder %v1145_v2, %v257_v20  ;;  %p236_p11 = scmp.ge.s32.totalorder %s239_s19, 25  }
  0x54   : > { %vm261_vm2 = vcmp.gt.f32.partialorder (%p236_p11), %v1151_v3, 1.0  ;;  %vm272_vm3 = vcmp.eq.s32.totalorder (%p236_p11), %v1145_v2, 24  ;;  %vm277_vm4 = vcmp.lt.s32.totalorder (%p236_p11), %v1145_v2, 25  ;;  %v937_v38 = vmov (%p236_p11), 0.0   ;;  %s1180_s8 = smov (%p236_p11), 0  }
  0x55   : >> { %v244_v11 = vstv %s243_s7  ;;  %v611_v24 = vsel (%p236_p11), %vm261_vm2, 1.0, %v965_v1  ;;  %v941_v39 = vmov (%p236_p11), 0.0  }
  0x56   : >> { %vm245_vm0 = vcmp.ge.f32.partialorder %v1151_v3, %v244_v11  ;;  %v264_v25 = vrot.slane (%p236_p11), %v611_v24, 4 }
  0x57   : >> { %v609_v13 = vsel %vm245_vm0, 1.0, %v966_v12 }
  0x58   : >> { %v248_v14 = vrot.slane %v609_v13, 4  ;;  %v265_v26 = vadd.f32 (%p236_p11), %v611_v24, %v264_v25 }
  0x5a   : >> { %v249_v15 = vadd.f32 %v609_v13, %v248_v14  ;;  %v266_v27 = vrot.slane (%p236_p11), %v265_v26, 2 }
  0x5c   : >> { %v250_v16 = vrot.slane %v249_v15, 2  ;;  %v267_v28 = vadd.f32 (%p236_p11), %v266_v27, %v265_v26 }
  0x5e   : >> { %v251_v17 = vadd.f32 %v250_v16, %v249_v15  ;;  %v268_v29 = vrot.slane (%p236_p11), %v267_v28, 1 }
  0x60   : >> { %v252_v18 = vrot.slane %v251_v17, 1  ;;  %v269_v30 = vadd.f32 (%p236_p11), %v268_v29, %v267_v28 }
  0x62   : >> { %v253_v19 = vadd.f32 %v252_v18, %v251_v17 }
  0x64   : >> { %254 = vadd.xlane.f32.xlu0 %v253_v19 }
  0x68   : > { %270 = vadd.xlane.f32.xlu0 (%p236_p11), %v269_v30 }
  0xef   : > { %238 = sbr.rel (!%p236_p11) target bundleno = 81 (0x51), region = 110 }
  0xf1   : >> { %v255_v21 = vpop.xlane.xlu0 %254  }
  0xf2   : >> { %v259_v22 = vsub.f32 %v927_v9, %v255_v21  ;;  %v926_v9 = vmov %v255_v21  }
  0xf4   : >> { %v260_v23 = vsel %vm258_vm1, %v259_v22, %v931_v10  }
  0xf5   : >> { %v930_v10 = vmov %v260_v23   ;;  %v271_v31 = vpop.xlane.xlu0 (%p236_p11), %270 }
  0xf6   : > { %v273_v32 = vsub.f32 %v255_v21, %v271_v31 }
  0xf8   : > { %v274_v33 = vsel %vm272_vm3, %v273_v32, %v260_v23 }
  0xf9   : > { %275 = vadd.xlane.f32.xlu0 %v274_v33 }
 0x186   : > { %v276_v34 = vpop.xlane.xlu0 %275 }
 0x187   : > { %v278_v35 = vmul.f32 0.04, %v276_v34 }
 0x189   : > { %v279_v36 = vsub.f32 %v274_v33, %v278_v35 }
 0x18b   : > { %v1178_v37 = vsel %vm277_vm4, %v279_v36, 0.0 }
 0x18c LB: >> { %s289_s22 = scvt.s32.f32 %s947_s8  ;;  %v967_v41 = vmov 0.0   ;;  %s613_s15 = sadd.s32 4294967295, %s947_s8  ;;  %s947_s8 = sphi %s1180_s8, %s286_s8   ;;  %v943_v39 = vphi %v941_v39, %v942_v39   ;;  %v939_v38 = vphi %v937_v38, %v938_v38  }
 0x18d   : >> { %v304_v49 = vstv %s613_s15  ;;  %s286_s8 = sadd.s32 1, %s947_s8  }
 0x18e   : >> { %s290_s9 = smul.f32 0.04, %s289_s22  ;;  %vm305_vm6 = vcmp.eq.s32.totalorder %v1145_v2, %v304_v49  ;;  %p283_p4 = scmp.ge.s32.totalorder %s286_s8, 25  }
 0x18f   : > { %vm308_vm7 = vcmp.gt.f32.partialorder (%p283_p4), %v1153_v4, 1.0  ;;  %v949_v11 = vmov (%p283_p4), 0.0   ;;  %v953_v12 = vmov (%p283_p4), 0.0   ;;  %s1193_s23 = smov (%p283_p4), 0  }
 0x190   : >> { %v291_v40 = vstv %s290_s9  ;;  %v614_v53 = vsel (%p283_p4), %vm308_vm7, 1.0, %v965_v1 }
 0x191   : >> { %vm292_vm5 = vcmp.ge.f32.partialorder %v1153_v4, %v291_v40  ;;  %v311_v54 = vrot.slane (%p283_p4), %v614_v53, 4 }
 0x192   : >> { %v612_v42 = vsel %vm292_vm5, 1.0, %v967_v41 }
 0x193   : >> { %v295_v43 = vrot.slane %v612_v42, 4  ;;  %v312_v55 = vadd.f32 (%p283_p4), %v614_v53, %v311_v54 }
 0x195   : >> { %v296_v44 = vadd.f32 %v612_v42, %v295_v43  ;;  %v313_v56 = vrot.slane (%p283_p4), %v312_v55, 2 }
 0x197   : >> { %v297_v45 = vrot.slane %v296_v44, 2  ;;  %v314_v57 = vadd.f32 (%p283_p4), %v313_v56, %v312_v55 }
 0x199   : >> { %v298_v46 = vadd.f32 %v297_v45, %v296_v44  ;;  %v315_v58 = vrot.slane (%p283_p4), %v314_v57, 1 }
 0x19b   : >> { %v299_v47 = vrot.slane %v298_v46, 1  ;;  %v316_v59 = vadd.f32 (%p283_p4), %v315_v58, %v314_v57 }
 0x19d   : >> { %v300_v48 = vadd.f32 %v299_v47, %v298_v46 }
 0x19f   : >> { %301 = vadd.xlane.f32.xlu0 %v300_v48 }
 0x1a3   : > { %317 = vadd.xlane.f32.xlu0 (%p283_p4), %v316_v59 }
 0x22a   : > { %285 = sbr.rel (!%p283_p4) target bundleno = 396 (0x18c), region = 121 }
 0x22c   : >> { %v302_v50 = vpop.xlane.xlu0 %301  }
 0x22d   : >> { %v306_v51 = vsub.f32 %v939_v38, %v302_v50  ;;  %v938_v38 = vmov %v302_v50  }
 0x22f   : >> { %v307_v52 = vsel %vm305_vm6, %v306_v51, %v943_v39  }
 0x230   : >> { %v942_v39 = vmov %v307_v52   ;;  %v318_v60 = vpop.xlane.xlu0 (%p283_p4), %317 }
 0x231   : > { %v319_v61 = vsub.f32 %v302_v50, %v318_v60 }
 0x233   : > { %v320_v62 = vsel %vm272_vm3, %v319_v61, %v307_v52 }
 0x234   : > { %321 = vadd.xlane.f32.xlu0 %v320_v62 }
 0x2c1   : > { %v322_v63 = vpop.xlane.xlu0 %321 }
 0x2c2   : > { %v323_v0 = vmul.f32 0.04, %v322_v63 }
 0x2c4   : > { %v324_v9 = vsub.f32 %v320_v62, %v323_v0 }
 0x2c6   : > { %v325_v10 = vsel %vm277_vm4, %v324_v9, 0.0 }
 0x2c7 LB: >> { %s334_s17 = scvt.s32.f32 %s959_s23  ;;  %v968_v14 = vmov 0.0   ;;  %s616_s3 = sadd.s32 4294967295, %s959_s23  ;;  %s959_s23 = sphi %s1193_s23, %s331_s23   ;;  %v955_v12 = vphi %v953_v12, %v954_v12   ;;  %v951_v11 = vphi %v949_v11, %v950_v11  }
 0x2c8   : >> { %v349_v22 = vstv %s616_s3  ;;  %s331_s23 = sadd.s32 1, %s959_s23  }
 0x2c9   : >> { %s335_s18 = smul.f32 0.04, %s334_s17  ;;  %vm350_vm9 = vcmp.eq.s32.totalorder %v1145_v2, %v349_v22  ;;  %p328_p8 = scmp.ge.s32.totalorder %s331_s23, 25  }
 0x2ca   : > { %vm353_vm10 = vcmp.gt.f32.partialorder (%p328_p8), %v1155_v5, 1.0  ;;  %v371_v33 = vmul.f32 (%p328_p8), %v1178_v37, %v1178_v37  ;;  %v374_v34 = vmul.f32 (%p328_p8), %v325_v10, %v325_v10  ;;  %v401_v46 = vsub.f32 (%p328_p8), %v1157_v6, %v1151_v3  ;;  %v404_v48 = vld [vmem:[#allocation2] sm:$0xff] (%p328_p8) }
 0x2cb   : >> { %v336_v13 = vstv %s335_s18  ;;  %v617_v26 = vsel (%p328_p8), %vm353_vm10, 1.0, %v965_v1  ;;  %v380_v1 = vmul.f32 (%p328_p8), %v325_v10, %v1178_v37  ;;  %v402_v49 = vsub.f32 (%p328_p8), %v1159_v7, %v1153_v4 }
 0x2cc   : >> { %vm337_vm8 = vcmp.ge.f32.partialorder %v1155_v5, %v336_v13  ;;  %v356_v27 = vrot.slane (%p328_p8), %v617_v26, 4  ;;  %372 = vadd.xlane.f32.xlu1 (%p328_p8), %v371_v33  ;;  %v405_v47 = vand.u32 (%p328_p8), 2147483647, %v401_v46  ;;  %v403_v2 = vsub.f32 (%p328_p8), %v1161_v8, %v1155_v5 }
 0x2cd   : >> { %v615_v15 = vsel %vm337_vm8, 1.0, %v968_v14  ;;  %v410_v51 = vand.u32 (%p328_p8), 2147483647, %v402_v49  ;;  %vm475_vm11 = vcmask (%p328_p8), 0  }
 0x2ce   : >> { %v340_v16 = vrot.slane %v615_v15, 4  ;;  %v357_v28 = vadd.f32 (%p328_p8), %v617_v26, %v356_v27  ;;  %v407_v50 = vadd.f32 (%p328_p8), %v405_v47, %v404_v48  ;;  %v415_v53 = vand.u32 (%p328_p8), 2147483647, %v403_v2 }
 0x2d0   : >> { %v341_v17 = vadd.f32 %v615_v15, %v340_v16  ;;  %v358_v29 = vrot.slane (%p328_p8), %v357_v28, 2  ;;  %375 = vadd.xlane.f32.xlu1 (%p328_p8), %v374_v34  ;;  %v412_v52 = vadd.f32 (%p328_p8), %v410_v51, %v407_v50 }
 0x2d2   : >> { %v342_v18 = vrot.slane %v341_v17, 2  ;;  %v359_v30 = vadd.f32 (%p328_p8), %v358_v29, %v357_v28  ;;  %v417_v54 = vadd.f32 (%p328_p8), %v415_v53, %v412_v52 }
 0x2d4   : >> { %v343_v19 = vadd.f32 %v342_v18, %v341_v17  ;;  %v360_v31 = vrot.slane (%p328_p8), %v359_v30, 1  ;;  %381 = vadd.xlane.f32.xlu1 (%p328_p8), %v380_v1  ;;  %418 = vst [vmem:[#allocation2] sm:$0xff] (%p328_p8), %v417_v54 }
 0x2d6   : >> { %v344_v20 = vrot.slane %v343_v19, 1  ;;  %v361_v32 = vadd.f32 (%p328_p8), %v360_v31, %v359_v30 }
 0x2d8   : >> { %v345_v21 = vadd.f32 %v344_v20, %v343_v19  ;;  %v423_v19 = vld [vmem:[#allocation3] sm:$0xff] (%p328_p8) }
 0x2da   : >> { %346 = vadd.xlane.f32.xlu0 %v345_v21 }
 0x2de   : > { %362 = vadd.xlane.f32.xlu0 (%p328_p8), %v361_v32 }
 0x365   : > { %330 = sbr.rel (!%p328_p8) target bundleno = 711 (0x2c7), region = 132 }
 0x367   : >> { %v347_v23 = vpop.xlane.xlu0 %346  }
 0x368   : >> { %v351_v24 = vsub.f32 %v951_v11, %v347_v23  ;;  %v950_v11 = vmov %v347_v23  }
 0x36a   : >> { %v352_v25 = vsel %vm350_vm9, %v351_v24, %v955_v12  }
 0x36b   : >> { %v954_v12 = vmov %v352_v25   ;;  %v363_v35 = vpop.xlane.xlu0 (%p328_p8), %362 }
 0x36c   : > { %v364_v36 = vsub.f32 %v347_v23, %v363_v35 }
 0x36e   : > { %v365_v38 = vsel %vm272_vm3, %v364_v36, %v352_v25 }
 0x36f   : > { %366 = vadd.xlane.f32.xlu0 %v365_v38 }
 0x3fc   : > { %v367_v39 = vpop.xlane.xlu0 %366 }
 0x3fd   : > { %v368_v40 = vmul.f32 0.04, %v367_v39 }
 0x3ff   : > { %v369_v41 = vsub.f32 %v365_v38, %v368_v40 }
 0x401   : > { %v370_v42 = vsel %vm277_vm4, %v369_v41, 0.0 }
 0x402   : > { %v394_v43 = vmul.f32 %v370_v42, %v325_v10  ;;  %v377_v44 = vmul.f32 %v370_v42, %v370_v42  ;;  %v387_v45 = vmul.f32 %v370_v42, %v1178_v37  ;;  %v373_v37 = vpop.xlane.xlu1 %372 }
 0x404   : > { %395 = vadd.xlane.f32.xlu1 %v394_v43  ;;  %378 = vadd.xlane.f32.xlu0 %v377_v44 }
 0x406   : > { %v376_v55 = vpop.xlane.xlu1 %375 }
 0x407   : > { %v383_v56 = vmul.f32 %v376_v55, %v373_v37 }
 0x408   : > { %388 = vadd.xlane.f32.xlu0 %v387_v45 }
 0x409   : > { %v384_v57 = vmax.f32 %v383_v56, 1e-12 }
 0x40a   : > { %v382_v60 = vpop.xlane.xlu1 %381 }
 0x40b   : > { %767 = vrsqrt.f32 %v384_v57 }
 0x40c   : > { %450 = vadd.xlane.f32.xlu0 %v417_v54 }
 0x415   : > { %v768_v7 = vpop.eup %767 }
 0x416   : > { %v386_v61 = vmul.f32 %v768_v7, %v382_v60 }
 0x418   : > { %v419_v5 = vmul.f32 %v402_v49, %v386_v61  ;;  %v428_v62 = vmul.f32 %v401_v46, %v386_v61 }
 0x41a   : > { %v420_v12 = vadd.f32 %v419_v5, %v401_v46  ;;  %v429_v15 = vadd.f32 %v428_v62, %v402_v49 }
 0x491   : > { %v379_v3 = vpop.xlane.xlu0 %378  ;;  %v396_v9 = vpop.xlane.xlu1 %395 }
 0x492   : > { %v390_v6 = vmul.f32 %v379_v3, %v373_v37  ;;  %v397_v58 = vmul.f32 %v379_v3, %v376_v55 }
 0x494   : > { %v391_v59 = vmax.f32 %v390_v6, 1e-12  ;;  %v398_v4 = vmax.f32 %v397_v58, 1e-12 }
 0x495   : > { %v389_v63 = vpop.xlane.xlu0 %388 }
 0x496   : > { %769 = vrsqrt.f32 %v391_v59 }
 0x497   : > { %771 = vrsqrt.f32 %v398_v4 }
 0x499   : > { %v451_v29 = vpop.xlane.xlu0 %450 }
 0x49a   : > { %v452_v30 = vrot.slane %v451_v29, 4 }
 0x49c   : > { %v453_v31 = vadd.f32 %v452_v30, %v451_v29 }
 0x49e   : > { %v454_v32 = vrot.slane %v453_v31, 2 }
 0x4a0   : > { %v770_v8 = vpop.eup %769  ;;  %v455_v33 = vadd.f32 %v454_v32, %v453_v31 }
 0x4a1   : > { %v772_v0 = vpop.eup %771  ;;  %v393_v10 = vmul.f32 %v770_v8, %v389_v63 }
 0x4a2   : > { %v400_v11 = vmul.f32 %v772_v0, %v396_v9  ;;  %v456_v34 = vrot.slane %v455_v33, 1 }
 0x4a3   : > { %v421_v13 = vmul.f32 %v403_v2, %v393_v10  ;;  %v437_v14 = vmul.f32 %v401_v46, %v393_v10 }
 0x4a4   : > { %v430_v16 = vmul.f32 %v403_v2, %v400_v11  ;;  %v438_v17 = vmul.f32 %v402_v49, %v400_v11  ;;  %v457_v35 = vadd.f32 %v456_v34, %v455_v33 }
 0x4a5   : > { %v422_v18 = vadd.f32 %v421_v13, %v420_v12 }
 0x4a6   : > { %v431_v20 = vadd.f32 %v430_v16, %v429_v15  ;;  %v439_v21 = vadd.f32 %v438_v17, %v437_v14  ;;  %625 = vpush %v457_v35 }
 0x4a7   : > { %v424_v22 = vand.u32 2147483647, %v422_v18 }
 0x4a8   : > { %v440_v23 = vadd.f32 %v439_v21, %v403_v2  ;;  %v433_v24 = vand.u32 2147483647, %v431_v20 }
 0x4a9   : > { %v426_v25 = vadd.f32 %v424_v22, %v423_v19 }
 0x4aa   : > { %v442_v27 = vand.u32 2147483647, %v440_v23 }
 0x4ab   : > { %v435_v26 = vadd.f32 %v433_v24, %v426_v25 }
 0x4ad   : > { %v444_v28 = vadd.f32 %v442_v27, %v435_v26 }
 0x4af   : > { %445 = vst [vmem:[#allocation3] sm:$0xff] %v444_v28  ;;  %461 = vadd.xlane.f32.xlu1 %v444_v28 }
 0x4d7   : > { %s626_s4 = spop %625 }
 0x4d8   : > { %v459_v43 = vstv %s626_s4 }
 0x4d9   : > { %v471_v45 = vmul.f32 0.8, %v459_v43 }
 0x53c   : > { %v462_v36 = vpop.xlane.xlu1 %461 }
 0x53d   : > { %v463_v38 = vrot.slane %v462_v36, 4 }
 0x53f   : > { %v464_v1 = vadd.f32 %v463_v38, %v462_v36 }
 0x541   : > { %v465_v39 = vrot.slane %v464_v1, 2 }
 0x543   : > { %v466_v40 = vadd.f32 %v465_v39, %v464_v1 }
 0x545   : > { %v467_v41 = vrot.slane %v466_v40, 1 }
 0x547   : > { %v468_v42 = vadd.f32 %v467_v41, %v466_v40 }
 0x549   : > { %627 = vpush %v468_v42 }
 0x57a   : > { %s628_s6 = spop %627 }
 0x57b   : > { %v470_v44 = vstv %s628_s6 }
 0x57c   : > { %v472_v46 = vmul.f32 0.2, %v470_v44 }
 0x57e   : > { %v473_v47 = vadd.f32 %v472_v46, %v471_v45 }
 0x580   : > { %v474_v48 = vmul.f32 0.0006510417, %v473_v47 }
 0x582   : > { %476 = vst.msk [vmem:[%s219_s28] sm:$0x1] %vm475_vm11, %v474_v48 }
 0x583 PF: > { %s18_s14 = sadd.s32 1, %s923_s14   ;;  %s1247_s9 = smov %s907_s10 }
 0x584   : > { %p15_p1 = scmp.ge.s32.totalorder %s18_s14, 4   ;;  %s1248_s10 = smov %s911_s11 }
 0x585   : > { %s1249_s11 = smov %s1029_s20  ;;  %s1250_s12 = smov %s919_s13 }
 0x586   : > { %s1251_s13 = smov %s1253_s16  ;;  %17 = sbr.rel (!%p15_p1) target bundleno = 6 (0x6), region = 143 }
 0x58d   :  { %494 = vsyncpa [#allocation5], 1 }
 0x58e   :  { %496 = vsyncpa [#allocation5 + $0x1], 1 }
 0x58f   :  { %497 = vsyncpa [#allocation7], 1 }
 0x590   :  { %499 = vsyncpa [#allocation7 + $0x1], 1 }

</bundles_post_ra>
